<compile_context>
chip_gen: v5e
topology: v5e:2x2
jax: 0.10.0
libtpu: 0.0.40
codegen_flags: <defaults>
</compile_context>

<pallas_src>
import jax
import jax.numpy as jnp
from jax.experimental import pallas as pl
from jax.experimental.pallas import tpu as pltpu


def _noise_injection_kernel(w_ref, feat_ref, noise_ref, o_ref):
    """out = feat + weight * noise   (noise broadcast over the channel axis).

    w_ref     : (1,)        f32  SMEM   -- learnable scalar weight
    feat_ref  : (N, C, HW)  f32  VMEM
    noise_ref : (N, 1, HW)  f32  VMEM
    o_ref     : (N, C, HW)  f32  VMEM
    """
    # Single fused pass: scalar * (N,1,HW) broadcast-added to (N,C,HW).
    o_ref[...] = feat_ref[...] + w_ref[0] * noise_ref[...]


def noise_injection(feat_nchw, weight, noise_nchw=None, *, key=None):
    """feat_nchw: (N, C, H, W) f32 (PyTorch layout).  Returns same shape.

    If `noise_nchw` is None, draws standard-normal noise of shape (N,1,H,W)
    using `key` (mirrors `torch.randn(batch, 1, H, W)` in the module).
    """
    N, C, H, W = feat_nchw.shape
    if noise_nchw is None:
        if key is None:
            raise ValueError("key must be provided when noise is None")
        noise_nchw = jax.random.normal(key, (N, 1, H, W), feat_nchw.dtype)

    # Flatten spatial dims so the lane axis is dense; pure layout plumbing.
    feat = feat_nchw.reshape(N, C, H * W)
    noise = noise_nchw.reshape(N, 1, H * W)
    w = jnp.asarray(weight, jnp.float32).reshape(1)

    flops = 2 * N * C * H * W                               # mul + add
    bytes_accessed = 4 * (2 * N * C * H * W + N * H * W + 1)

    out = pl.pallas_call(
        _noise_injection_kernel,
        out_shape=jax.ShapeDtypeStruct((N, C, H * W), feat_nchw.dtype),
        # Tiny working set -> no grid; whole arrays resident in VMEM,
        # scalar weight on the scalar (SMEM) path.
        in_specs=[
            pl.BlockSpec(memory_space=pltpu.MemorySpace.SMEM),   # weight
            pl.BlockSpec(memory_space=pltpu.MemorySpace.VMEM),   # feat
            pl.BlockSpec(memory_space=pltpu.MemorySpace.VMEM),   # noise
        ],
        out_specs=pl.BlockSpec(memory_space=pltpu.MemorySpace.VMEM),
        cost_estimate=pl.CostEstimate(
            flops=flops, transcendentals=0, bytes_accessed=bytes_accessed),
    )(w, feat, noise)

    return out.reshape(N, C, H, W)


if __name__ == "__main__":
    key = jax.random.PRNGKey(0)
    k_feat, k_noise0, k_noise1 = jax.random.split(key, 3)

    N, C, H, W = 2, 4, 16, 16
    feat = jax.random.normal(k_feat, (N, C, H, W), jnp.float32)

    # --- Case 1: module at init (weight = 0), noise drawn internally. -------
    w_init = jnp.zeros((1,), jnp.float32)          # nn.Parameter(torch.zeros(1))
    out0 = jax.jit(lambda f: noise_injection(f, w_init, key=k_noise0))(feat)
    out0 = jax.block_until_ready(out0)
    assert out0.shape == (N, C, H, W), out0.shape
    assert out0.dtype == jnp.float32
    # weight == 0  ->  output is exactly feat.
    assert bool(jnp.allclose(out0, feat)), "weight=0 path mismatch"

    # --- Case 2: nonzero weight, explicit noise, check vs pure-JAX ref. -----
    w_val = jnp.asarray([0.3], jnp.float32)
    noise = jax.random.normal(k_noise1, (N, 1, H, W), jnp.float32)
    out1 = jax.jit(lambda f, n: noise_injection(f, w_val, n))(feat, noise)
    out1 = jax.block_until_ready(out1)
    ref = feat + w_val[0] * noise                  # broadcast over channel dim
    assert out1.shape == (N, C, H, W), out1.shape
    assert bool(jnp.all(jnp.isfinite(out1)))
    assert bool(jnp.allclose(out1, ref, rtol=1e-6, atol=1e-6)), "ref mismatch"

    print("KERNEL_OK")
</pallas_src>

<mosaic_0001>
module attributes {stable_mosaic.version = 11 : i64} {
  func.func @_noise_injection_kernel(%arg0: memref<1xf32, #tpu.memory_space<smem>>, %arg1: memref<2x4x256xf32, #tpu.memory_space<vmem>>, %arg2: memref<2x1x256xf32, #tpu.memory_space<vmem>>, %arg3: memref<2x4x256xf32, #tpu.memory_space<vmem>>) attributes {dimension_semantics = [], scalar_prefetch = 0 : i64, scratch_operands = 0 : i64, tpu.core_type = #tpu.core_type<tc>} {
    %c0 = arith.constant 0 : index
    %c0_0 = arith.constant 0 : index
    %c0_1 = arith.constant 0 : index
    %0 = vector.load %arg1[%c0, %c0_0, %c0_1] : memref<2x4x256xf32, #tpu.memory_space<vmem>>, vector<2x4x256xf32>
    %c0_2 = arith.constant 0 : index
    %1 = memref.load %arg0[%c0_2] : memref<1xf32, #tpu.memory_space<smem>>
    %c0_3 = arith.constant 0 : index
    %c0_4 = arith.constant 0 : index
    %c0_5 = arith.constant 0 : index
    %2 = vector.load %arg2[%c0_3, %c0_4, %c0_5] : memref<2x1x256xf32, #tpu.memory_space<vmem>>, vector<2x1x256xf32>
    %3 = vector.broadcast %1 : f32 to vector<2x1x256xf32>
    %4 = arith.mulf %3, %2 : vector<2x1x256xf32>
    %5 = vector.broadcast %4 : vector<2x1x256xf32> to vector<2x4x256xf32>
    %6 = arith.addf %0, %5 : vector<2x4x256xf32>
    %c0_6 = arith.constant 0 : index
    %c0_7 = arith.constant 0 : index
    %c0_8 = arith.constant 0 : index
    %7 = vector.load %arg3[%c0_6, %c0_7, %c0_8] : memref<2x4x256xf32, #tpu.memory_space<vmem>>, vector<2x4x256xf32>
    tpu.vector_store %arg3[%c0_6, %c0_7, %c0_8], %6 {strides = array<i32>} : memref<2x4x256xf32, #tpu.memory_space<vmem>>, vector<2x4x256xf32>,
    return
  }
}

</mosaic_0001>

<bundles_post_ra>
// kernel: _lambda_.1
= control target key start
LH: loop header
LB: loop body
LE: loop exit
PB: predicated region body
PF: predicated region fallthrough
CT: control target
= control target key end

     0   :  { %vm31_vm0 = vcmask 1043456   ;;  %s85_s0 = inlined_call_operand.<no memory space> [shape: f32[1], index: 0, kind: input, shape index: {}]   ;;  %s86_s2 = inlined_call_operand.vmem [shape: f32[2,1,256], index: 2, kind: input, shape index: {}]   ;;  %s87_s1 = inlined_call_operand.vmem [shape: f32[2,4,256], index: 1, kind: input, shape index: {}]   ;;  %s88_s3 = inlined_call_operand.vmem [shape: f32[2,4,256], index: 3, kind: output, shape index: {}]  }
   0x1   :  { %v18_v0 = vld [vmem:[%s86_s2] sm:$0x3]  ;;  %v20_v1 = vstv %s85_s0  ;;  %v19_v3 = vld [vmem:[%s86_s2 + $0x2] sm:$0x3]  ;;  %v16_v11 = vld [vmem:[%s87_s1 + $0x8] sm:$0xff] }
   0x2   :  { %v21_v2 = vmul.f32 %v20_v1, %v18_v0  ;;  %v22_v4 = vmul.f32 %v20_v1, %v19_v3  ;;  %v15_v9 = vld [vmem:[%s87_s1] sm:$0xff] }
   0x4   :  { %v25_v5 = vperm.slane %v21_v2, 0  ;;  %v26_v6 = vperm.slane %v21_v2, 1  ;;  %v27_v7 = vperm.slane %v22_v4, 0  ;;  %v28_v8 = vperm.slane %v22_v4, 1 }
   0x6   :  { %v29_v10 = vrot.slane %v26_v6, 4  ;;  %v30_v12 = vrot.slane %v28_v8, 4 }
   0x8   :  { %v32_v13 = vsel %vm31_vm0, %v25_v5, %v29_v10  ;;  %v33_v15 = vsel %vm31_vm0, %v27_v7, %v30_v12 }
   0x9   :  { %v36_v14 = vadd.f32 %v32_v13, %v15_v9  ;;  %v37_v16 = vadd.f32 %v33_v15, %v16_v11 }
   0xb   :  { %38 = vst [vmem:[%s88_s3] sm:$0xff] %v36_v14 }
   0xc   :  { %39 = vst [vmem:[%s88_s3 + $0x8] sm:$0xff] %v37_v16 }

</bundles_post_ra>
